<compile_context>
chip_gen: v5e
topology: v5e:2x2
jax: 0.10.0
libtpu: 0.0.40
codegen_flags: <defaults>
</compile_context>

<pallas_src>
import math

import numpy as np
import jax
import jax.numpy as jnp
from jax.experimental import pallas as pl
from jax.experimental.pallas import tpu as pltpu


def transform_parameters(weights):
    """JAX port of transform_parameters (pure glue, rearrangement only).

    weights: (4, O, I, S_in, kH, kW)
    returns: (4, O*4, I*S_in, kH, kW)
    """
    G, O, I, S, kH, kW = weights.shape
    w0 = weights
    w1 = jnp.roll(jnp.flip(weights, axis=(3, 4)), shift=2, axis=3)
    w2 = jnp.roll(jnp.flip(weights, axis=(5,)), shift=2, axis=3)
    w3 = jnp.flip(weights, axis=(3, 4, 5))
    tw = jnp.stack([w0, w1, w2, w3], axis=2)        # (4, O, 4, I, S, kH, kW)
    return tw.reshape(G, O * 4, I * S, kH, kW)


def _pt_padding(kernel_size):
    """PyTorch-equivalent circular padding amounts: ((top, bottom), (left, right))."""
    kH, kW = kernel_size

    def pads(k):
        return ((k - 1) // 2, k // 2) if k % 2 == 0 else (k // 2, k // 2)

    return pads(kH), pads(kW)


def _im2col_index(H, W, kH, kW, pt, pL, B):
    """Constant gather index: idx[t, b*H*W + p] maps output pixel p and tap t
    (t = kh*kW + kw) to the circularly-padded source pixel, for batch element b
    laid out along the lane (N) axis."""
    kh = np.arange(kH).reshape(kH, 1, 1, 1)
    kw = np.arange(kW).reshape(1, kW, 1, 1)
    h = np.arange(H).reshape(1, 1, H, 1)
    w = np.arange(W).reshape(1, 1, 1, W)
    src = ((h + kh - pt) % H) * W + ((w + kw - pL) % W)       # (kH, kW, H, W)
    idx = src.reshape(kH * kW, H * W)
    idx = idx[:, None, :] + (np.arange(B) * (H * W))[None, :, None]
    return idx.reshape(kH * kW, B * H * W).astype(np.int32)


def _pick_grid_steps(G):
    """2 parallel grid steps on multi-TensorCore chips (v7x / megacore), else 1."""
    kind = ""
    try:
        kind = jax.devices()[0].device_kind.lower()
    except Exception:  # pragma: no cover - defensive, detection is best-effort
        pass
    multi_tc = any(t in kind for t in ("v7", "v4", "v5p"))
    return 2 if (multi_tc and G % 2 == 0) else 1


def _conv_kernel(x_ref, w_ref, b_ref, o_ref):
    """One (or two) symmetry groups per grid step.

    x_ref: (gpb, K, B*HW)      bf16 im2col rows, lanes = B*HW (128-aligned)
    w_ref: (gpb, Cout, K)      bf16 transformed weights (K = kH*kW*Cin)
    b_ref: (gpb, Cout, 1)      f32 per-group bias (zeros for groups 0/1)
    o_ref: (B, gpb, Cout, HW)  f32 lane-dense output
    """
    nb, gpb, _, hw = o_ref.shape
    for gl in range(gpb):                       # gpb <= 4: static unroll
        acc = jnp.dot(w_ref[gl], x_ref[gl],
                      preferred_element_type=jnp.float32)     # (Cout, B*HW)
        acc = acc + b_ref[gl]                   # (Cout, 1) broadcast over lanes
        for b in range(nb):                     # 128-aligned lane slices -> dense vst
            o_ref[b, gl] = acc[:, b * hw:(b + 1) * hw].astype(o_ref.dtype)


def refconv2d_forward(x, weights, bias, kernel_size, compute_dtype=jnp.bfloat16):
    """x: (B, 4, in_channels, S_in, H, W) -> (B, 4, out_channels, 4, H, W)."""
    B, G, C, S, H, W = x.shape
    kH, kW = kernel_size
    O = weights.shape[1]
    Cin, Cout = C * S, O * 4
    HW = H * W
    K = Cin * kH * kW
    (pt, _pb), (pL, _pR) = _pt_padding(kernel_size)

    # Weights: (4, Cout, Cin, kH, kW) -> (G, Cout, K); column index = ci*(kH*kW)+kh*kW+kw
    # (a free, contiguous reshape of transform_parameters' output).
    wk = transform_parameters(weights).reshape(G, Cout, K).astype(compute_dtype)

    # Input im2col in a single gather: (B,G,Cin,HW) -> (G,Cin,B*HW) -> (G, K, B*HW).
    idx = _im2col_index(H, W, kH, kW, pt, pL, B)              # constant (kH*kW, B*HW)
    xt = jnp.transpose(x.reshape(B, G, Cin, HW).astype(compute_dtype),
                       (1, 2, 0, 3)).reshape(G, Cin, B * HW)
    xrows = xt[:, :, idx].reshape(G, K, B * HW)

    # Per-group bias, fused into the kernel epilogue (only groups 2/3 = l_t/l_x).
    bias_full = jnp.zeros((G, Cout), jnp.float32)
    if bias is not None:
        bias_full = bias_full.at[2:].set(
            jnp.broadcast_to(bias.astype(jnp.float32).reshape(2, O, 1),
                             (2, O, 4)).reshape(2, Cout))
    bias_full = bias_full.reshape(G, Cout, 1)

    steps = _pick_grid_steps(G)
    gpb = G // steps

    itemsize = jnp.dtype(compute_dtype).itemsize
    cost = pl.CostEstimate(
        flops=2 * G * Cout * K * B * HW,
        transcendentals=0,
        bytes_accessed=(G * K * B * HW + G * Cout * K) * itemsize
        + G * Cout * 4 + B * G * Cout * HW * 4,
    )

    out = pl.pallas_call(
        _conv_kernel,
        out_shape=jax.ShapeDtypeStruct((B, G, Cout, HW), jnp.float32),
        grid=(steps,),
        in_specs=[
            pl.BlockSpec((gpb, K, B * HW), lambda s: (s, 0, 0)),
            pl.BlockSpec((gpb, Cout, K), lambda s: (s, 0, 0)),
            pl.BlockSpec((gpb, Cout, 1), lambda s: (s, 0, 0)),
        ],
        out_specs=pl.BlockSpec((B, gpb, Cout, HW), lambda s: (0, s, 0, 0)),
        compiler_params=pltpu.CompilerParams(dimension_semantics=("parallel",)),
        cost_estimate=cost,
    )(xrows, wk, bias_full)                                    # (B, G, Cout, H*W)

    return out.reshape(B, G, O, 4, H, W)                       # free (contiguous) split


def refconv2d_reference(x, weights, bias, kernel_size):
    """Pure-JAX reference (XLA conv, f32) with identical semantics, for verification."""
    B, G, C, S, H, W = x.shape
    kH, kW = kernel_size
    O = weights.shape[1]
    (pt, pb), (pL, pR) = _pt_padding(kernel_size)
    tw = transform_parameters(weights)
    xi = x.reshape(B, G, C * S, H, W)
    outs = []
    for i in range(4):
        xpad = jnp.pad(xi[:, i], ((0, 0), (0, 0), (pt, pb), (pL, pR)), mode="wrap")
        o = jax.lax.conv_general_dilated(
            xpad, tw[i], window_strides=(1, 1), padding="VALID",
            dimension_numbers=("NCHW", "OIHW", "NCHW"),
            precision=jax.lax.Precision.HIGHEST)
        outs.append(o)
    out = jnp.stack(outs, axis=1).reshape(B, G, O, 4, H, W)
    if bias is not None:
        bfull = jnp.zeros((1, G, O, 1, 1, 1), out.dtype).at[:, 2:].set(
            bias.reshape(1, 2, O, 1, 1, 1))
        out = out + bfull
    return out


if __name__ == "__main__":
    # Small, deterministic setup consistent with the module (first layer: S_in = 1).
    B, in_channels, S_in, H, W = 2, 4, 1, 16, 16
    out_channels, kH, kW = 4, 3, 3

    key = jax.random.PRNGKey(0)
    k_x, k_w, k_b = jax.random.split(key, 3)

    stdv = 1.0 / math.sqrt(in_channels * kH * kW)
    weights = jax.random.uniform(
        k_w, (4, out_channels, in_channels, S_in, kH, kW), jnp.float32, -stdv, stdv)
    bias = jax.random.uniform(k_b, (2 * out_channels,), jnp.float32, -stdv, stdv)
    x = jax.random.normal(k_x, (B, 4, in_channels, S_in, H, W), jnp.float32)

    fwd = jax.jit(refconv2d_forward, static_argnames=("kernel_size", "compute_dtype"))
    out = jax.block_until_ready(fwd(x, weights, bias, kernel_size=(kH, kW)))
    assert out.shape == (B, 4, out_channels, 4, H, W), out.shape

    # 1) Tight check against an f32 reference fed the same bf16-quantized operands:
    #    kernel must match to f32-accumulation rounding.
    xq = x.astype(jnp.bfloat16).astype(jnp.float32)
    wq = weights.astype(jnp.bfloat16).astype(jnp.float32)
    ref_q = jax.block_until_ready(refconv2d_reference(xq, wq, bias, (kH, kW)))
    err_q = float(jnp.max(jnp.abs(out - ref_q)))
    assert jnp.allclose(out, ref_q, rtol=1e-3, atol=1e-3), f"quantized-ref max_err={err_q}"

    # 2) Loose sanity check against the full-precision f32 reference (error bounded
    #    by bf16 input quantization).
    ref = jax.block_until_ready(refconv2d_reference(x, weights, bias, (kH, kW)))
    err = float(jnp.max(jnp.abs(out - ref)))
    assert jnp.allclose(out, ref, rtol=5e-2, atol=5e-2), f"f32-ref max_err={err}"

    print("KERNEL_OK")
</pallas_src>

<mosaic_0001>
module attributes {stable_mosaic.version = 11 : i64} {
  func.func @_conv_kernel(%arg0: i32, %arg1: memref<4x36x512xbf16, #tpu.memory_space<vmem>>, %arg2: memref<4x16x36xbf16, #tpu.memory_space<vmem>>, %arg3: memref<4x16x1xf32, #tpu.memory_space<vmem>>, %arg4: memref<2x4x16x256xf32, #tpu.memory_space<vmem>>) attributes {dimension_semantics = [#tpu.dimension_semantics<parallel>], iteration_bounds = array<i64: 1>, scalar_prefetch = 0 : i64, scratch_operands = 0 : i64, tpu.core_type = #tpu.core_type<tc>, window_params = [{transform_indices = @transform_0, window_bounds = array<i64: 4, 36, 512>}, {transform_indices = @transform_1, window_bounds = array<i64: 4, 16, 36>}, {transform_indices = @transform_2, window_bounds = array<i64: 4, 16, 1>}, {transform_indices = @transform_3, window_bounds = array<i64: 2, 4, 16, 256>}]} {
    %c0 = arith.constant 0 : index
    %c0_0 = arith.constant 0 : index
    %c0_1 = arith.constant 0 : index
    %0 = vector.load %arg2[%c0, %c0_0, %c0_1] : memref<4x16x36xbf16, #tpu.memory_space<vmem>>, vector<1x16x36xbf16>
    %1 = vector.shape_cast %0 : vector<1x16x36xbf16> to vector<16x36xbf16>
    %c0_2 = arith.constant 0 : index
    %c0_3 = arith.constant 0 : index
    %c0_4 = arith.constant 0 : index
    %2 = vector.load %arg1[%c0_2, %c0_3, %c0_4] : memref<4x36x512xbf16, #tpu.memory_space<vmem>>, vector<1x36x512xbf16>
    %3 = vector.shape_cast %2 : vector<1x36x512xbf16> to vector<36x512xbf16>
    %cst = arith.constant dense<0.000000e+00> : vector<16x512xf32>
    %4 = tpu.matmul %1, %3, %cst {dimension_numbers = #tpu.dot_dimension_numbers<[1], [0], [0], [1], [0, 0, 1, 1], [], []>} : vector<16x36xbf16>, vector<36x512xbf16>, vector<16x512xf32> -> vector<16x512xf32>
    %c0_5 = arith.constant 0 : index
    %c0_6 = arith.constant 0 : index
    %c0_7 = arith.constant 0 : index
    %5 = vector.load %arg3[%c0_5, %c0_6, %c0_7] : memref<4x16x1xf32, #tpu.memory_space<vmem>>, vector<1x16x1xf32>
    %6 = vector.shape_cast %5 : vector<1x16x1xf32> to vector<16x1xf32>
    %7 = vector.broadcast %6 : vector<16x1xf32> to vector<16x512xf32>
    %8 = arith.addf %4, %7 : vector<16x512xf32>
    %9 = vector.extract_strided_slice %8 {offsets = [0, 0], sizes = [16, 256], strides = [1, 1]} : vector<16x512xf32> to vector<16x256xf32>
    %c0_8 = arith.constant 0 : index
    %c0_9 = arith.constant 0 : index
    %c0_10 = arith.constant 0 : index
    %c0_11 = arith.constant 0 : index
    %10 = vector.load %arg4[%c0_8, %c0_9, %c0_10, %c0_11] : memref<2x4x16x256xf32, #tpu.memory_space<vmem>>, vector<1x1x16x256xf32>
    %11 = vector.shape_cast %10 : vector<1x1x16x256xf32> to vector<16x256xf32>
    %12 = vector.shape_cast %9 : vector<16x256xf32> to vector<1x1x16x256xf32>
    tpu.vector_store %arg4[%c0_8, %c0_9, %c0_10, %c0_11], %12 {strides = array<i32>} : memref<2x4x16x256xf32, #tpu.memory_space<vmem>>, vector<1x1x16x256xf32>,
    %13 = vector.extract_strided_slice %8 {offsets = [0, 256], sizes = [16, 256], strides = [1, 1]} : vector<16x512xf32> to vector<16x256xf32>
    %c1 = arith.constant 1 : index
    %c0_12 = arith.constant 0 : index
    %c0_13 = arith.constant 0 : index
    %c0_14 = arith.constant 0 : index
    %14 = vector.load %arg4[%c1, %c0_12, %c0_13, %c0_14] : memref<2x4x16x256xf32, #tpu.memory_space<vmem>>, vector<1x1x16x256xf32>
    %15 = vector.shape_cast %14 : vector<1x1x16x256xf32> to vector<16x256xf32>
    %16 = vector.shape_cast %13 : vector<16x256xf32> to vector<1x1x16x256xf32>
    tpu.vector_store %arg4[%c1, %c0_12, %c0_13, %c0_14], %16 {strides = array<i32>} : memref<2x4x16x256xf32, #tpu.memory_space<vmem>>, vector<1x1x16x256xf32>,
    %c1_15 = arith.constant 1 : index
    %c0_16 = arith.constant 0 : index
    %c0_17 = arith.constant 0 : index
    %17 = vector.load %arg2[%c1_15, %c0_16, %c0_17] : memref<4x16x36xbf16, #tpu.memory_space<vmem>>, vector<1x16x36xbf16>
    %18 = vector.shape_cast %17 : vector<1x16x36xbf16> to vector<16x36xbf16>
    %c1_18 = arith.constant 1 : index
    %c0_19 = arith.constant 0 : index
    %c0_20 = arith.constant 0 : index
    %19 = vector.load %arg1[%c1_18, %c0_19, %c0_20] : memref<4x36x512xbf16, #tpu.memory_space<vmem>>, vector<1x36x512xbf16>
    %20 = vector.shape_cast %19 : vector<1x36x512xbf16> to vector<36x512xbf16>
    %cst_21 = arith.constant dense<0.000000e+00> : vector<16x512xf32>
    %21 = tpu.matmul %18, %20, %cst_21 {dimension_numbers = #tpu.dot_dimension_numbers<[1], [0], [0], [1], [0, 0, 1, 1], [], []>} : vector<16x36xbf16>, vector<36x512xbf16>, vector<16x512xf32> -> vector<16x512xf32>
    %c1_22 = arith.constant 1 : index
    %c0_23 = arith.constant 0 : index
    %c0_24 = arith.constant 0 : index
    %22 = vector.load %arg3[%c1_22, %c0_23, %c0_24] : memref<4x16x1xf32, #tpu.memory_space<vmem>>, vector<1x16x1xf32>
    %23 = vector.shape_cast %22 : vector<1x16x1xf32> to vector<16x1xf32>
    %24 = vector.broadcast %23 : vector<16x1xf32> to vector<16x512xf32>
    %25 = arith.addf %21, %24 : vector<16x512xf32>
    %26 = vector.extract_strided_slice %25 {offsets = [0, 0], sizes = [16, 256], strides = [1, 1]} : vector<16x512xf32> to vector<16x256xf32>
    %c0_25 = arith.constant 0 : index
    %c1_26 = arith.constant 1 : index
    %c0_27 = arith.constant 0 : index
    %c0_28 = arith.constant 0 : index
    %27 = vector.load %arg4[%c0_25, %c1_26, %c0_27, %c0_28] : memref<2x4x16x256xf32, #tpu.memory_space<vmem>>, vector<1x1x16x256xf32>
    %28 = vector.shape_cast %27 : vector<1x1x16x256xf32> to vector<16x256xf32>
    %29 = vector.shape_cast %26 : vector<16x256xf32> to vector<1x1x16x256xf32>
    tpu.vector_store %arg4[%c0_25, %c1_26, %c0_27, %c0_28], %29 {strides = array<i32>} : memref<2x4x16x256xf32, #tpu.memory_space<vmem>>, vector<1x1x16x256xf32>,
    %30 = vector.extract_strided_slice %25 {offsets = [0, 256], sizes = [16, 256], strides = [1, 1]} : vector<16x512xf32> to vector<16x256xf32>
    %c1_29 = arith.constant 1 : index
    %c1_30 = arith.constant 1 : index
    %c0_31 = arith.constant 0 : index
    %c0_32 = arith.constant 0 : index
    %31 = vector.load %arg4[%c1_29, %c1_30, %c0_31, %c0_32] : memref<2x4x16x256xf32, #tpu.memory_space<vmem>>, vector<1x1x16x256xf32>
    %32 = vector.shape_cast %31 : vector<1x1x16x256xf32> to vector<16x256xf32>
    %33 = vector.shape_cast %30 : vector<16x256xf32> to vector<1x1x16x256xf32>
    tpu.vector_store %arg4[%c1_29, %c1_30, %c0_31, %c0_32], %33 {strides = array<i32>} : memref<2x4x16x256xf32, #tpu.memory_space<vmem>>, vector<1x1x16x256xf32>,
    %c2 = arith.constant 2 : index
    %c0_33 = arith.constant 0 : index
    %c0_34 = arith.constant 0 : index
    %34 = vector.load %arg2[%c2, %c0_33, %c0_34] : memref<4x16x36xbf16, #tpu.memory_space<vmem>>, vector<1x16x36xbf16>
    %35 = vector.shape_cast %34 : vector<1x16x36xbf16> to vector<16x36xbf16>
    %c2_35 = arith.constant 2 : index
    %c0_36 = arith.constant 0 : index
    %c0_37 = arith.constant 0 : index
    %36 = vector.load %arg1[%c2_35, %c0_36, %c0_37] : memref<4x36x512xbf16, #tpu.memory_space<vmem>>, vector<1x36x512xbf16>
    %37 = vector.shape_cast %36 : vector<1x36x512xbf16> to vector<36x512xbf16>
    %cst_38 = arith.constant dense<0.000000e+00> : vector<16x512xf32>
    %38 = tpu.matmul %35, %37, %cst_38 {dimension_numbers = #tpu.dot_dimension_numbers<[1], [0], [0], [1], [0, 0, 1, 1], [], []>} : vector<16x36xbf16>, vector<36x512xbf16>, vector<16x512xf32> -> vector<16x512xf32>
    %c2_39 = arith.constant 2 : index
    %c0_40 = arith.constant 0 : index
    %c0_41 = arith.constant 0 : index
    %39 = vector.load %arg3[%c2_39, %c0_40, %c0_41] : memref<4x16x1xf32, #tpu.memory_space<vmem>>, vector<1x16x1xf32>
    %40 = vector.shape_cast %39 : vector<1x16x1xf32> to vector<16x1xf32>
    %41 = vector.broadcast %40 : vector<16x1xf32> to vector<16x512xf32>
    %42 = arith.addf %38, %41 : vector<16x512xf32>
    %43 = vector.extract_strided_slice %42 {offsets = [0, 0], sizes = [16, 256], strides = [1, 1]} : vector<16x512xf32> to vector<16x256xf32>
    %c0_42 = arith.constant 0 : index
    %c2_43 = arith.constant 2 : index
    %c0_44 = arith.constant 0 : index
    %c0_45 = arith.constant 0 : index
    %44 = vector.load %arg4[%c0_42, %c2_43, %c0_44, %c0_45] : memref<2x4x16x256xf32, #tpu.memory_space<vmem>>, vector<1x1x16x256xf32>
    %45 = vector.shape_cast %44 : vector<1x1x16x256xf32> to vector<16x256xf32>
    %46 = vector.shape_cast %43 : vector<16x256xf32> to vector<1x1x16x256xf32>
    tpu.vector_store %arg4[%c0_42, %c2_43, %c0_44, %c0_45], %46 {strides = array<i32>} : memref<2x4x16x256xf32, #tpu.memory_space<vmem>>, vector<1x1x16x256xf32>,
    %47 = vector.extract_strided_slice %42 {offsets = [0, 256], sizes = [16, 256], strides = [1, 1]} : vector<16x512xf32> to vector<16x256xf32>
    %c1_46 = arith.constant 1 : index
    %c2_47 = arith.constant 2 : index
    %c0_48 = arith.constant 0 : index
    %c0_49 = arith.constant 0 : index
    %48 = vector.load %arg4[%c1_46, %c2_47, %c0_48, %c0_49] : memref<2x4x16x256xf32, #tpu.memory_space<vmem>>, vector<1x1x16x256xf32>
    %49 = vector.shape_cast %48 : vector<1x1x16x256xf32> to vector<16x256xf32>
    %50 = vector.shape_cast %47 : vector<16x256xf32> to vector<1x1x16x256xf32>
    tpu.vector_store %arg4[%c1_46, %c2_47, %c0_48, %c0_49], %50 {strides = array<i32>} : memref<2x4x16x256xf32, #tpu.memory_space<vmem>>, vector<1x1x16x256xf32>,
    %c3 = arith.constant 3 : index
    %c0_50 = arith.constant 0 : index
    %c0_51 = arith.constant 0 : index
    %51 = vector.load %arg2[%c3, %c0_50, %c0_51] : memref<4x16x36xbf16, #tpu.memory_space<vmem>>, vector<1x16x36xbf16>
    %52 = vector.shape_cast %51 : vector<1x16x36xbf16> to vector<16x36xbf16>
    %c3_52 = arith.constant 3 : index
    %c0_53 = arith.constant 0 : index
    %c0_54 = arith.constant 0 : index
    %53 = vector.load %arg1[%c3_52, %c0_53, %c0_54] : memref<4x36x512xbf16, #tpu.memory_space<vmem>>, vector<1x36x512xbf16>
    %54 = vector.shape_cast %53 : vector<1x36x512xbf16> to vector<36x512xbf16>
    %cst_55 = arith.constant dense<0.000000e+00> : vector<16x512xf32>
    %55 = tpu.matmul %52, %54, %cst_55 {dimension_numbers = #tpu.dot_dimension_numbers<[1], [0], [0], [1], [0, 0, 1, 1], [], []>} : vector<16x36xbf16>, vector<36x512xbf16>, vector<16x512xf32> -> vector<16x512xf32>
    %c3_56 = arith.constant 3 : index
    %c0_57 = arith.constant 0 : index
    %c0_58 = arith.constant 0 : index
    %56 = vector.load %arg3[%c3_56, %c0_57, %c0_58] : memref<4x16x1xf32, #tpu.memory_space<vmem>>, vector<1x16x1xf32>
    %57 = vector.shape_cast %56 : vector<1x16x1xf32> to vector<16x1xf32>
    %58 = vector.broadcast %57 : vector<16x1xf32> to vector<16x512xf32>
    %59 = arith.addf %55, %58 : vector<16x512xf32>
    %60 = vector.extract_strided_slice %59 {offsets = [0, 0], sizes = [16, 256], strides = [1, 1]} : vector<16x512xf32> to vector<16x256xf32>
    %c0_59 = arith.constant 0 : index
    %c3_60 = arith.constant 3 : index
    %c0_61 = arith.constant 0 : index
    %c0_62 = arith.constant 0 : index
    %61 = vector.load %arg4[%c0_59, %c3_60, %c0_61, %c0_62] : memref<2x4x16x256xf32, #tpu.memory_space<vmem>>, vector<1x1x16x256xf32>
    %62 = vector.shape_cast %61 : vector<1x1x16x256xf32> to vector<16x256xf32>
    %63 = vector.shape_cast %60 : vector<16x256xf32> to vector<1x1x16x256xf32>
    tpu.vector_store %arg4[%c0_59, %c3_60, %c0_61, %c0_62], %63 {strides = array<i32>} : memref<2x4x16x256xf32, #tpu.memory_space<vmem>>, vector<1x1x16x256xf32>,
    %64 = vector.extract_strided_slice %59 {offsets = [0, 256], sizes = [16, 256], strides = [1, 1]} : vector<16x512xf32> to vector<16x256xf32>
    %c1_63 = arith.constant 1 : index
    %c3_64 = arith.constant 3 : index
    %c0_65 = arith.constant 0 : index
    %c0_66 = arith.constant 0 : index
    %65 = vector.load %arg4[%c1_63, %c3_64, %c0_65, %c0_66] : memref<2x4x16x256xf32, #tpu.memory_space<vmem>>, vector<1x1x16x256xf32>
    %66 = vector.shape_cast %65 : vector<1x1x16x256xf32> to vector<16x256xf32>
    %67 = vector.shape_cast %64 : vector<16x256xf32> to vector<1x1x16x256xf32>
    tpu.vector_store %arg4[%c1_63, %c3_64, %c0_65, %c0_66], %67 {strides = array<i32>} : memref<2x4x16x256xf32, #tpu.memory_space<vmem>>, vector<1x1x16x256xf32>,
    return
  }
  func.func @transform_0(%arg0: i32) -> (i32, i32, i32) {
    %c0_i32 = arith.constant 0 : i32
    %c0_i32_0 = arith.constant 0 : i32
    %c0_i32_1 = arith.constant 0 : i32
    return %arg0, %c0_i32, %c0_i32_0 : i32, i32, i32
  }
  func.func @transform_1(%arg0: i32) -> (i32, i32, i32) {
    %c0_i32 = arith.constant 0 : i32
    %c0_i32_0 = arith.constant 0 : i32
    %c0_i32_1 = arith.constant 0 : i32
    return %arg0, %c0_i32, %c0_i32_0 : i32, i32, i32
  }
  func.func @transform_2(%arg0: i32) -> (i32, i32, i32) {
    %c0_i32 = arith.constant 0 : i32
    %c0_i32_0 = arith.constant 0 : i32
    %c0_i32_1 = arith.constant 0 : i32
    return %arg0, %c0_i32, %c0_i32_0 : i32, i32, i32
  }
  func.func @transform_3(%arg0: i32) -> (i32, i32, i32, i32) {
    %c0_i32 = arith.constant 0 : i32
    %c0_i32_0 = arith.constant 0 : i32
    %c0_i32_1 = arith.constant 0 : i32
    %c0_i32_2 = arith.constant 0 : i32
    return %c0_i32, %arg0, %c0_i32_0, %c0_i32_1 : i32, i32, i32, i32
  }
}

</mosaic_0001>

<bundles_post_ra>
// kernel: refconv2d_forward.1
= control target key start
LH: loop header
LB: loop body
LE: loop exit
PB: predicated region body
PF: predicated region fallthrough
CT: control target
= control target key end

     0   :  { %v939_v2 = vmov 0   ;;  %vm98_vm0 = vcmask 1041408   ;;  %vm94_vm1 = vcmask 293888   ;;  %s1340_s0 = inlined_call_operand.vmem [shape: bf16[4,36,512], index: 0, kind: input, shape index: {}]   ;;  %s1341_s2 = inlined_call_operand.vmem [shape: f32[4,16,1], index: 2, kind: input, shape index: {}]   ;;  %s1342_s1 = inlined_call_operand.vmem [shape: bf16[4,16,36], index: 1, kind: input, shape index: {}]   ;;  %s1343_s3 = inlined_call_operand.vmem [shape: f32[2,4,16,256], index: 3, kind: output, shape index: {}]  }
   0x1   :  { %v25_v0 = vld [vmem:[%s1340_s0 + $0x40] sm:$0x33]  ;;  %v26_v1 = vld [vmem:[%s1340_s0 + $0x48] sm:$0x33]  ;;  %936 = vset.pattern.permute.xlu0 %v939_v2  ;;  %937 = vset.pattern.permute.xlu1 %v939_v2  ;;  %v906_v8 = vld [vmem:[%s1340_s0 + $0x2c] sm:$0xf0] }
   0x2   :  { %v70_v3 = vunpack.c.l.b16 %v25_v0  ;;  %v71_v4 = vunpack.c.h.b16 %v25_v0  ;;  %v72_v5 = vunpack.c.l.b16 %v26_v1  ;;  %v73_v6 = vunpack.c.h.b16 %v26_v1  ;;  %938 = vset.pattern.permute.xlu2 %v939_v2  ;;  %v691_v7 = vld [vmem:[%s1340_s0 + $0x20] sm:$0xf]  ;;  %v904_v13 = vld [vmem:[%s1340_s0 + $0x24] sm:$0xf]  ;;  %v693_v14 = vld [vmem:[%s1340_s0 + $0x30] sm:$0xf0] }
   0x3   :  { %v699_v15 = vld [vmem:[%s1340_s0 + $0x28] sm:$0xf]  ;;  %v907_v16 = vld [vmem:[%s1340_s0 + $0x34] sm:$0xf0]  ;;  %v905_v17 = vld [vmem:[%s1340_s0 + $0x2c] sm:$0xf]  ;;  %v692_v24 = vor.u32 %v906_v8, %v691_v7  ;;  %v696_v25 = vor.u32 %v904_v13, %v693_v14 }
   0x4   :  { %v82_v9 = vpack.c.b16 %v70_v3, %v70_v3  ;;  %v83_v10 = vpack.c.b16 %v71_v4, %v71_v4  ;;  %v84_v11 = vpack.c.b16 %v72_v5, %v72_v5  ;;  %v85_v12 = vpack.c.b16 %v73_v6, %v73_v6  ;;  %v701_v18 = vld [vmem:[%s1340_s0 + $0x38] sm:$0xf0]  ;;  %v675_v23 = vld [vmem:[%s1340_s0] sm:$0xf]  ;;  %v902_v26 = vld [vmem:[%s1340_s0 + $0xc] sm:$0xf0] }
   0x5   :  { %v900_v27 = vld [vmem:[%s1340_s0 + $0x4] sm:$0xf]  ;;  %v677_v28 = vld [vmem:[%s1340_s0 + $0x10] sm:$0xf0]  ;;  %v700_v29 = vor.u32 %v907_v16, %v699_v15  ;;  %v704_v30 = vor.u32 %v905_v17, %v701_v18  ;;  %v683_v31 = vld [vmem:[%s1340_s0 + $0x8] sm:$0xf]  ;;  %v676_v41 = vor.u32 %v902_v26, %v675_v23 }
   0x6   :  { %v100_v19 = vsel %vm98_vm0, %v82_v9, 0  ;;  %v103_v20 = vsel %vm98_vm0, %v83_v10, 0  ;;  %v106_v21 = vsel %vm98_vm0, %v84_v11, 0  ;;  %v109_v22 = vsel %vm98_vm0, %v85_v12, 0  ;;  %v724_v32 = vld [vmem:[%s1340_s0 + $0x98] sm:$0x33] }
   0x7   :  { %116 = vmatpush.bf16.msra.mxu0 %v100_v19  ;;  %130 = vmatpush.bf16.msra.mxu1 %v103_v20  ;;  %v723_v33 = vld [vmem:[%s1340_s0 + $0x90] sm:$0x33]  ;;  %v903_v34 = vld [vmem:[%s1340_s0 + $0x14] sm:$0xf0]  ;;  %v901_v35 = vld [vmem:[%s1340_s0 + $0xc] sm:$0xf]  ;;  %v236_v37 = vunpack.c.l.b16 %v724_v32  ;;  %v237_v38 = vunpack.c.h.b16 %v724_v32  ;;  %v680_v42 = vor.u32 %v900_v27, %v677_v28 }
   0x8   :  { %144 = vmatpush.bf16.msra.mxu2 %v106_v21  ;;  %158 = vmatpush.bf16.msra.mxu3 %v109_v22  ;;  %v685_v36 = vld [vmem:[%s1340_s0 + $0x18] sm:$0xf0]  ;;  %v234_v39 = vunpack.c.l.b16 %v723_v33  ;;  %v235_v40 = vunpack.c.h.b16 %v723_v33  ;;  %v27_v45 = vld [vmem:[%s1341_s2] sm:$0xff]  ;;  %v684_v46 = vor.u32 %v903_v34, %v683_v31  ;;  %v757_v51 = vld [vmem:[%s1340_s0 + $0x78] sm:$0xf] }
   0x9   :  { %v248_v43 = vpack.c.b16 %v236_v37, %v236_v37  ;;  %v249_v44 = vpack.c.b16 %v237_v38, %v237_v38  ;;  %v688_v47 = vor.u32 %v901_v35, %v685_v36  ;;  %v899_v48 = vld [vmem:[%s1342_s1] sm:$0xff]  ;;  %v916_v52 = vld [vmem:[%s1340_s0 + $0x84] sm:$0xf0]  ;;  %31 = vperm.xlu0 %936, %v27_v45   ;;  %v914_v55 = vld [vmem:[%s1340_s0 + $0x7c] sm:$0xf] }
   0xa   :  { %v246_v49 = vpack.c.b16 %v234_v39, %v234_v39  ;;  %v247_v50 = vpack.c.b16 %v235_v40, %v235_v40  ;;  %v759_v56 = vld [vmem:[%s1340_s0 + $0x88] sm:$0xf0]  ;;  %v785_v58 = vld [vmem:[%s1340_s0 + $0xe0] sm:$0x33]  ;;  %v749_v59 = vld [vmem:[%s1340_s0 + $0x70] sm:$0xf]  ;;  %v758_v2 = vor.u32 %v916_v52, %v757_v51 }
   0xb   :  { %117 = vmatpush.bf16.msra.mxu0 %v692_v24  ;;  %131 = vmatpush.bf16.msra.mxu1 %v696_v25  ;;  %v268_v53 = vsel %vm98_vm0, %v248_v43, 0  ;;  %v271_v54 = vsel %vm98_vm0, %v249_v44, 0  ;;  %v786_v57 = vld [vmem:[%s1340_s0 + $0xe8] sm:$0x33]  ;;  %v915_v60 = vld [vmem:[%s1340_s0 + $0x7c] sm:$0xf0]  ;;  %v762_v3 = vor.u32 %v914_v55, %v759_v56  ;;  %v397_v9 = vunpack.c.l.b16 %v785_v58 }
   0xc   :  { %145 = vmatpush.bf16.msra.mxu2 %v700_v29  ;;  %159 = vmatpush.bf16.msra.mxu3 %v704_v30  ;;  %v913_v61 = vld [vmem:[%s1340_s0 + $0x74] sm:$0xf]  ;;  %v399_v62 = vunpack.c.l.b16 %v786_v57  ;;  %v400_v63 = vunpack.c.h.b16 %v786_v57  ;;  %v262_v0 = vsel %vm98_vm0, %v246_v49, 0  ;;  %v265_v1 = vsel %vm98_vm0, %v247_v50, 0  ;;  %v751_v4 = vld [vmem:[%s1340_s0 + $0x80] sm:$0xf0] }
   0xd   :  { %v741_v5 = vld [vmem:[%s1340_s0 + $0x58] sm:$0xf]  ;;  %v912_v6 = vld [vmem:[%s1340_s0 + $0x64] sm:$0xf0]  ;;  %v910_v7 = vld [vmem:[%s1340_s0 + $0x5c] sm:$0xf]  ;;  %v398_v10 = vunpack.c.h.b16 %v785_v58  ;;  %v750_v15 = vor.u32 %v915_v60, %v749_v59  ;;  %v754_v16 = vor.u32 %v913_v61, %v751_v4  ;;  %v409_v23 = vpack.c.b16 %v397_v9, %v397_v9 }
   0xe   :  { %v743_v8 = vld [vmem:[%s1340_s0 + $0x68] sm:$0xf0]  ;;  %v411_v11 = vpack.c.b16 %v399_v62, %v399_v62  ;;  %v412_v12 = vpack.c.b16 %v400_v63, %v400_v63  ;;  %v725_v14 = vld [vmem:[%s1341_s2 + $0x10] sm:$0xff]  ;;  %v742_v18 = vor.u32 %v912_v6, %v741_v5  ;;  %v911_v20 = vld [vmem:[%s1340_s0 + $0x5c] sm:$0xf0] }
   0xf   :  { %118 = vmatpush.bf16.msra.mxu0 %v676_v41  ;;  %132 = vmatpush.bf16.msra.mxu1 %v680_v42  ;;  %v28_v13 = vld [vmem:[%s1341_s2 + $0x8] sm:$0xff]  ;;  %v733_v17 = vld [vmem:[%s1340_s0 + $0x50] sm:$0xf]  ;;  %v746_v19 = vor.u32 %v910_v7, %v743_v8  ;;  %v909_v21 = vld [vmem:[%s1340_s0 + $0x54] sm:$0xf]  ;;  %v410_v24 = vpack.c.b16 %v398_v10, %v398_v10  ;;  %v425_v37 = vsel %vm98_vm0, %v409_v23, 0 }
  0x10   :  { %146 = vmatpush.bf16.msra.mxu2 %v684_v46  ;;  %160 = vmatpush.bf16.msra.mxu3 %v688_v47  ;;  %v735_v22 = vld [vmem:[%s1340_s0 + $0x60] sm:$0xf0]  ;;  %v819_v25 = vld [vmem:[%s1340_s0 + $0xc8] sm:$0xf]  ;;  %v925_v26 = vld [vmem:[%s1340_s0 + $0xd4] sm:$0xf0]  ;;  %v734_v31 = vor.u32 %v911_v20, %v733_v17 }
  0x11   :  { %36 = vperm.xlu0 %936, %v28_v13   ;;  %195 = vperm.xlu1 %937, %v725_v14   ;;  %v431_v27 = vsel %vm98_vm0, %v411_v11, 0  ;;  %v434_v28 = vsel %vm98_vm0, %v412_v12, 0  ;;  %v923_v29 = vld [vmem:[%s1340_s0 + $0xcc] sm:$0xf]  ;;  %v821_v30 = vld [vmem:[%s1340_s0 + $0xd8] sm:$0xf0]  ;;  %v738_v32 = vor.u32 %v909_v21, %v735_v22  ;;  %v820_v39 = vor.u32 %v925_v26, %v819_v25 }
  0x12   :  { %705 = vmatmul.msk.bf16.vlgmr.msra.gmra.mxu0 %vm94_vm1, %v899_v48  ;;  %706 = vmatmul.msk.bf16.vlgmr.msra.gmra.mxu1 %vm94_vm1, %v899_v48  ;;  %v848_v33 = vld [vmem:[%s1340_s0 + $0x138] sm:$0x33]  ;;  %v811_v34 = vld [vmem:[%s1340_s0 + $0xc0] sm:$0xf]  ;;  %v924_v35 = vld [vmem:[%s1340_s0 + $0xcc] sm:$0xf0]  ;;  %v824_v40 = vor.u32 %v923_v29, %v821_v30 }
  0x13   :  { %707 = vmatmul.msk.bf16.vlgmr.msra.gmra.mxu2 %vm94_vm1, %v899_v48  ;;  %708 = vmatmul.msk.bf16.vlgmr.msra.gmra.mxu3 %vm94_vm1, %v899_v48  ;;  %v847_v36 = vld [vmem:[%s1340_s0 + $0x130] sm:$0x33]  ;;  %v428_v38 = vsel %vm98_vm0, %v410_v24, 0  ;;  %v922_v41 = vld [vmem:[%s1340_s0 + $0xc4] sm:$0xf]  ;;  %v562_v43 = vunpack.c.l.b16 %v848_v33  ;;  %v563_v44 = vunpack.c.h.b16 %v848_v33  ;;  %v908_v45 = vld [vmem:[%s1342_s1 + $0x8] sm:$0xff]  ;;  %v812_v51 = vor.u32 %v924_v35, %v811_v34 }
  0x14   :  { %306 = vmatpush.bf16.msrb.mxu2 %v268_v53  ;;  %320 = vmatpush.bf16.msrb.mxu3 %v271_v54  ;;  %v813_v42 = vld [vmem:[%s1340_s0 + $0xd0] sm:$0xf0]  ;;  %v803_v46 = vld [vmem:[%s1340_s0 + $0xa8] sm:$0xf]  ;;  %v921_v47 = vld [vmem:[%s1340_s0 + $0xb4] sm:$0xf0]  ;;  %v560_v49 = vunpack.c.l.b16 %v847_v36  ;;  %v561_v50 = vunpack.c.h.b16 %v847_v36 }
  0x15   :  { %278 = vmatpush.bf16.msrb.mxu0 %v262_v0  ;;  %292 = vmatpush.bf16.msrb.mxu1 %v265_v1  ;;  %v726_v48 = vld [vmem:[%s1341_s2 + $0x18] sm:$0xff]  ;;  %v816_v52 = vor.u32 %v922_v41, %v813_v42  ;;  %v919_v53 = vld [vmem:[%s1340_s0 + $0xac] sm:$0xf]  ;;  %v795_v55 = vld [vmem:[%s1340_s0 + $0xa0] sm:$0xf]  ;;  %v574_v59 = vpack.c.b16 %v562_v43, %v562_v43  ;;  %v575_v60 = vpack.c.b16 %v563_v44, %v563_v44 }
  0x16   :  { %v805_v54 = vld [vmem:[%s1340_s0 + $0xb8] sm:$0xf0]  ;;  %v920_v56 = vld [vmem:[%s1340_s0 + $0xac] sm:$0xf0]  ;;  %v918_v57 = vld [vmem:[%s1340_s0 + $0xa4] sm:$0xf]  ;;  %v804_v61 = vor.u32 %v921_v47, %v803_v46  ;;  %v572_v63 = vpack.c.b16 %v560_v49, %v560_v49  ;;  %v573_v0 = vpack.c.b16 %v561_v50, %v561_v50 }
  0x17   :  { %v797_v58 = vld [vmem:[%s1340_s0 + $0xb0] sm:$0xf0]  ;;  %v808_v62 = vor.u32 %v919_v53, %v805_v54  ;;  %v796_v1 = vor.u32 %v920_v56, %v795_v55  ;;  %v934_v4 = vld [vmem:[%s1340_s0 + $0x124] sm:$0xf0]  ;;  %v932_v5 = vld [vmem:[%s1340_s0 + $0x11c] sm:$0xf] }
  0x18   :  { %307 = vmatpush.bf16.msrb.mxu2 %v758_v2  ;;  %321 = vmatpush.bf16.msrb.mxu3 %v762_v3  ;;  %v800_v2 = vor.u32 %v918_v57, %v797_v58  ;;  %v881_v3 = vld [vmem:[%s1340_s0 + $0x118] sm:$0xf]  ;;  %v883_v6 = vld [vmem:[%s1340_s0 + $0x128] sm:$0xf0]  ;;  %v594_v7 = vsel %vm98_vm0, %v574_v59, 0  ;;  %v597_v8 = vsel %vm98_vm0, %v575_v60, 0 }
  0x19   :  { %279 = vmatpush.bf16.msrb.mxu0 %v750_v15  ;;  %293 = vmatpush.bf16.msrb.mxu1 %v754_v16  ;;  %v873_v9 = vld [vmem:[%s1340_s0 + $0x110] sm:$0xf]  ;;  %v933_v10 = vld [vmem:[%s1340_s0 + $0x11c] sm:$0xf0]  ;;  %v588_v11 = vsel %vm98_vm0, %v572_v63, 0  ;;  %v591_v12 = vsel %vm98_vm0, %v573_v0, 0  ;;  %v882_v17 = vor.u32 %v934_v4, %v881_v3 }
  0x1a   :  { %200 = vperm.xlu1 %937, %v726_v48   ;;  %v931_v13 = vld [vmem:[%s1340_s0 + $0x114] sm:$0xf]  ;;  %v875_v14 = vld [vmem:[%s1340_s0 + $0x120] sm:$0xf0]  ;;  %v850_v15 = vld [vmem:[%s1341_s2 + $0x38] sm:$0xff]  ;;  %v874_v22 = vor.u32 %v933_v10, %v873_v9 }
  0x1b   :  { %v849_v16 = vld [vmem:[%s1341_s2 + $0x30] sm:$0xff]  ;;  %v930_v20 = vld [vmem:[%s1340_s0 + $0x104] sm:$0xf0]  ;;  %v787_v21 = vld [vmem:[%s1341_s2 + $0x20] sm:$0xff]  ;;  %v878_v23 = vor.u32 %v931_v13, %v875_v14 }
  0x1c   :  { %308 = vmatpush.bf16.msrb.mxu2 %v742_v18  ;;  %322 = vmatpush.bf16.msrb.mxu3 %v746_v19  ;;  %v886_v18 = vor.u32 %v932_v5, %v883_v6  ;;  %v865_v19 = vld [vmem:[%s1340_s0 + $0xf8] sm:$0xf]  ;;  %v928_v24 = vld [vmem:[%s1340_s0 + $0xfc] sm:$0xf]  ;;  %v867_v25 = vld [vmem:[%s1340_s0 + $0x108] sm:$0xf0] }
  0x1d   :  { %280 = vmatpush.bf16.msrb.mxu0 %v734_v31  ;;  %294 = vmatpush.bf16.msrb.mxu1 %v738_v32  ;;  %v857_v26 = vld [vmem:[%s1340_s0 + $0xf0] sm:$0xf]  ;;  %v859_v29 = vld [vmem:[%s1340_s0 + $0x100] sm:$0xf0]  ;;  %v866_v30 = vor.u32 %v930_v20, %v865_v19  ;;  %v870_v31 = vor.u32 %v928_v24, %v867_v25  ;;  %v788_v35 = vld [vmem:[%s1341_s2 + $0x28] sm:$0xff] }
  0x1e   :  { %521 = vperm.xlu0 %936, %v849_v16   ;;  %358 = vperm.xlu2 %938, %v787_v21   ;;  %v917_v34 = vld [vmem:[%s1342_s1 + $0x10] sm:$0xff]  ;;  %v926_v36 = vld [vmem:[%s1342_s1 + $0x18] sm:$0xff] }
  0x20   :  { %469 = vmatpush.bf16.msra.mxu2 %v431_v27  ;;  %483 = vmatpush.bf16.msra.mxu3 %v434_v28  ;;  %v929_v27 = vld [vmem:[%s1340_s0 + $0xfc] sm:$0xf0]  ;;  %v927_v28 = vld [vmem:[%s1340_s0 + $0xf4] sm:$0xf] }
  0x21   :  { %441 = vmatpush.bf16.msra.mxu0 %v425_v37  ;;  %455 = vmatpush.bf16.msra.mxu1 %v428_v38  ;;  %v858_v32 = vor.u32 %v929_v27, %v857_v26  ;;  %v862_v33 = vor.u32 %v927_v28, %v859_v29 }
  0x22   :  { %763 = vmatmul.msk.bf16.vlgmr.msrb.gmra.mxu0 %vm94_vm1, %v908_v45  ;;  %764 = vmatmul.msk.bf16.vlgmr.msrb.gmra.mxu1 %vm94_vm1, %v908_v45 }
  0x23   :  { %765 = vmatmul.msk.bf16.vlgmr.msrb.gmra.mxu2 %vm94_vm1, %v908_v45  ;;  %766 = vmatmul.msk.bf16.vlgmr.msrb.gmra.mxu3 %vm94_vm1, %v908_v45 }
  0x24   :  { %470 = vmatpush.bf16.msra.mxu2 %v820_v39  ;;  %484 = vmatpush.bf16.msra.mxu3 %v824_v40 }
  0x25   :  { %442 = vmatpush.bf16.msra.mxu0 %v812_v51  ;;  %456 = vmatpush.bf16.msra.mxu1 %v816_v52 }
  0x26   :  { %526 = vperm.xlu1 %937, %v850_v15   ;;  %363 = vperm.xlu2 %938, %v788_v35  }
  0x28   :  { %471 = vmatpush.bf16.msra.mxu2 %v804_v61  ;;  %485 = vmatpush.bf16.msra.mxu3 %v808_v62 }
  0x29   :  { %443 = vmatpush.bf16.msra.mxu0 %v796_v1  ;;  %457 = vmatpush.bf16.msra.mxu1 %v800_v2 }
  0x2c   :  { %632 = vmatpush.bf16.msrb.mxu2 %v594_v7  ;;  %646 = vmatpush.bf16.msrb.mxu3 %v597_v8 }
  0x2d   :  { %604 = vmatpush.bf16.msrb.mxu0 %v588_v11  ;;  %618 = vmatpush.bf16.msrb.mxu1 %v591_v12 }
  0x30   :  { %633 = vmatpush.bf16.msrb.mxu2 %v882_v17  ;;  %647 = vmatpush.bf16.msrb.mxu3 %v886_v18 }
  0x31   :  { %605 = vmatpush.bf16.msrb.mxu0 %v874_v22  ;;  %619 = vmatpush.bf16.msrb.mxu1 %v878_v23 }
  0x32   :  { %825 = vmatmul.msk.bf16.vlgmr.msra.gmra.mxu0 %vm94_vm1, %v917_v34  ;;  %826 = vmatmul.msk.bf16.vlgmr.msra.gmra.mxu1 %vm94_vm1, %v917_v34 }
  0x33   :  { %827 = vmatmul.msk.bf16.vlgmr.msra.gmra.mxu2 %vm94_vm1, %v917_v34  ;;  %828 = vmatmul.msk.bf16.vlgmr.msra.gmra.mxu3 %vm94_vm1, %v917_v34 }
  0x34   :  { %634 = vmatpush.bf16.msrb.mxu2 %v866_v30  ;;  %648 = vmatpush.bf16.msrb.mxu3 %v870_v31 }
  0x35   :  { %606 = vmatpush.bf16.msrb.mxu0 %v858_v32  ;;  %620 = vmatpush.bf16.msrb.mxu1 %v862_v33 }
  0x42   :  { %887 = vmatmul.msk.bf16.vlgmr.msrb.gmra.mxu0 %vm94_vm1, %v926_v36  ;;  %888 = vmatmul.msk.bf16.vlgmr.msrb.gmra.mxu1 %vm94_vm1, %v926_v36 }
  0x43   :  { %889 = vmatmul.msk.bf16.vlgmr.msrb.gmra.mxu2 %vm94_vm1, %v926_v36  ;;  %890 = vmatmul.msk.bf16.vlgmr.msrb.gmra.mxu3 %vm94_vm1, %v926_v36 }
  0x78   :  { %v359_v5 = vpop.permute.xlu2 %358 }
  0x7b   :  { %v32_v37 = vpop.permute.xlu0 %31 }
  0x80   :  { %v364_v14 = vpop.permute.xlu2 %363 }
  0x83   :  { %v37_v42 = vpop.permute.xlu0 %36  ;;  %v196_v51 = vpop.permute.xlu1 %195 }
  0x8c   :  { %v201_v60 = vpop.permute.xlu1 %200 }
  0x8f   :  { %v120_v38 = vpop.f32.mrf.mxu0  ;;  %v134_v39 = vpop.f32.mrf.mxu1 }
  0x90   :  { %v121_v40 = vadd.f32 %v120_v38, %v32_v37  ;;  %v135_v41 = vadd.f32 %v134_v39, %v32_v37  ;;  %v522_v23 = vpop.permute.xlu0 %521 }
  0x92   :  { %167 = vst [vmem:[%s1343_s3] sm:$0xff] %v121_v40 }
  0x93   :  { %168 = vst [vmem:[%s1343_s3 + $0x8] sm:$0xff] %v135_v41 }
  0x96   :  { %v148_v43 = vpop.f32.mrf.mxu2  ;;  %v162_v44 = vpop.f32.mrf.mxu3 }
  0x97   :  { %v149_v45 = vadd.f32 %v148_v43, %v32_v37  ;;  %v163_v46 = vadd.f32 %v162_v44, %v32_v37  ;;  %v122_v47 = vpop.f32.mrf.mxu0  ;;  %v136_v48 = vpop.f32.mrf.mxu1 }
  0x98   :  { %v123_v49 = vadd.f32 %v122_v47, %v37_v42  ;;  %v137_v50 = vadd.f32 %v136_v48, %v37_v42  ;;  %v527_v32 = vpop.permute.xlu1 %526 }
  0x99   :  { %709 = vst [vmem:[%s1343_s3 + $0x80] sm:$0xff] %v149_v45 }
  0x9a   :  { %710 = vst [vmem:[%s1343_s3 + $0x88] sm:$0xff] %v163_v46 }
  0x9b   :  { %169 = vst [vmem:[%s1343_s3 + $0x10] sm:$0xff] %v123_v49 }
  0x9c   :  { %170 = vst [vmem:[%s1343_s3 + $0x18] sm:$0xff] %v137_v50 }
  0x9e   :  { %v150_v52 = vpop.f32.mrf.mxu2  ;;  %v164_v53 = vpop.f32.mrf.mxu3 }
  0x9f   :  { %v151_v54 = vadd.f32 %v150_v52, %v37_v42  ;;  %v165_v55 = vadd.f32 %v164_v53, %v37_v42  ;;  %v282_v56 = vpop.f32.mrf.mxu0  ;;  %v296_v57 = vpop.f32.mrf.mxu1 }
  0xa0   :  { %v283_v58 = vadd.f32 %v282_v56, %v196_v51  ;;  %v297_v59 = vadd.f32 %v296_v57, %v196_v51 }
  0xa1   :  { %711 = vst [vmem:[%s1343_s3 + $0x90] sm:$0xff] %v151_v54 }
  0xa2   :  { %712 = vst [vmem:[%s1343_s3 + $0x98] sm:$0xff] %v165_v55 }
  0xa3   :  { %767 = vst [vmem:[%s1343_s3 + $0x20] sm:$0xff] %v283_v58 }
  0xa4   :  { %768 = vst [vmem:[%s1343_s3 + $0x28] sm:$0xff] %v297_v59 }
  0xa6   :  { %v310_v61 = vpop.f32.mrf.mxu2  ;;  %v324_v62 = vpop.f32.mrf.mxu3 }
  0xa7   :  { %v311_v63 = vadd.f32 %v310_v61, %v196_v51  ;;  %v325_v0 = vadd.f32 %v324_v62, %v196_v51  ;;  %v284_v1 = vpop.f32.mrf.mxu0  ;;  %v298_v2 = vpop.f32.mrf.mxu1 }
  0xa8   :  { %v285_v3 = vadd.f32 %v284_v1, %v201_v60  ;;  %v299_v4 = vadd.f32 %v298_v2, %v201_v60 }
  0xa9   :  { %771 = vst [vmem:[%s1343_s3 + $0xa0] sm:$0xff] %v311_v63 }
  0xaa   :  { %772 = vst [vmem:[%s1343_s3 + $0xa8] sm:$0xff] %v325_v0 }
  0xab   :  { %769 = vst [vmem:[%s1343_s3 + $0x30] sm:$0xff] %v285_v3 }
  0xac   :  { %770 = vst [vmem:[%s1343_s3 + $0x38] sm:$0xff] %v299_v4 }
  0xae   :  { %v312_v6 = vpop.f32.mrf.mxu2  ;;  %v326_v7 = vpop.f32.mrf.mxu3 }
  0xaf   :  { %v313_v8 = vadd.f32 %v312_v6, %v201_v60  ;;  %v327_v9 = vadd.f32 %v326_v7, %v201_v60  ;;  %v445_v10 = vpop.f32.mrf.mxu0  ;;  %v459_v11 = vpop.f32.mrf.mxu1 }
  0xb0   :  { %v446_v12 = vadd.f32 %v445_v10, %v359_v5  ;;  %v460_v13 = vadd.f32 %v459_v11, %v359_v5 }
  0xb1   :  { %773 = vst [vmem:[%s1343_s3 + $0xb0] sm:$0xff] %v313_v8 }
  0xb2   :  { %774 = vst [vmem:[%s1343_s3 + $0xb8] sm:$0xff] %v327_v9 }
  0xb3   :  { %829 = vst [vmem:[%s1343_s3 + $0x40] sm:$0xff] %v446_v12 }
  0xb4   :  { %830 = vst [vmem:[%s1343_s3 + $0x48] sm:$0xff] %v460_v13 }
  0xb6   :  { %v473_v15 = vpop.f32.mrf.mxu2  ;;  %v487_v16 = vpop.f32.mrf.mxu3 }
  0xb7   :  { %v474_v17 = vadd.f32 %v473_v15, %v359_v5  ;;  %v488_v18 = vadd.f32 %v487_v16, %v359_v5  ;;  %v447_v19 = vpop.f32.mrf.mxu0  ;;  %v461_v20 = vpop.f32.mrf.mxu1 }
  0xb8   :  { %v448_v21 = vadd.f32 %v447_v19, %v364_v14  ;;  %v462_v22 = vadd.f32 %v461_v20, %v364_v14 }
  0xb9   :  { %833 = vst [vmem:[%s1343_s3 + $0xc0] sm:$0xff] %v474_v17 }
  0xba   :  { %834 = vst [vmem:[%s1343_s3 + $0xc8] sm:$0xff] %v488_v18 }
  0xbb   :  { %831 = vst [vmem:[%s1343_s3 + $0x50] sm:$0xff] %v448_v21 }
  0xbc   :  { %832 = vst [vmem:[%s1343_s3 + $0x58] sm:$0xff] %v462_v22 }
  0xbe   :  { %v475_v24 = vpop.f32.mrf.mxu2  ;;  %v489_v25 = vpop.f32.mrf.mxu3 }
  0xbf   :  { %v476_v26 = vadd.f32 %v475_v24, %v364_v14  ;;  %v490_v27 = vadd.f32 %v489_v25, %v364_v14  ;;  %v608_v28 = vpop.f32.mrf.mxu0  ;;  %v622_v29 = vpop.f32.mrf.mxu1 }
  0xc0   :  { %v609_v30 = vadd.f32 %v608_v28, %v522_v23  ;;  %v623_v31 = vadd.f32 %v622_v29, %v522_v23 }
  0xc1   :  { %835 = vst [vmem:[%s1343_s3 + $0xd0] sm:$0xff] %v476_v26 }
  0xc2   :  { %836 = vst [vmem:[%s1343_s3 + $0xd8] sm:$0xff] %v490_v27 }
  0xc3   :  { %891 = vst [vmem:[%s1343_s3 + $0x60] sm:$0xff] %v609_v30 }
  0xc4   :  { %892 = vst [vmem:[%s1343_s3 + $0x68] sm:$0xff] %v623_v31 }
  0xc6   :  { %v636_v33 = vpop.f32.mrf.mxu2  ;;  %v650_v34 = vpop.f32.mrf.mxu3 }
  0xc7   :  { %v637_v35 = vadd.f32 %v636_v33, %v522_v23  ;;  %v651_v36 = vadd.f32 %v650_v34, %v522_v23  ;;  %v610_v37 = vpop.f32.mrf.mxu0  ;;  %v624_v38 = vpop.f32.mrf.mxu1 }
  0xc8   :  { %v611_v39 = vadd.f32 %v610_v37, %v527_v32  ;;  %v625_v40 = vadd.f32 %v624_v38, %v527_v32 }
  0xc9   :  { %895 = vst [vmem:[%s1343_s3 + $0xe0] sm:$0xff] %v637_v35 }
  0xca   :  { %896 = vst [vmem:[%s1343_s3 + $0xe8] sm:$0xff] %v651_v36 }
  0xcb   :  { %893 = vst [vmem:[%s1343_s3 + $0x70] sm:$0xff] %v611_v39 }
  0xcc   :  { %894 = vst [vmem:[%s1343_s3 + $0x78] sm:$0xff] %v625_v40 }
  0xce   :  { %v638_v41 = vpop.f32.mrf.mxu2  ;;  %v652_v42 = vpop.f32.mrf.mxu3 }
  0xcf   :  { %v639_v43 = vadd.f32 %v638_v41, %v527_v32  ;;  %v653_v44 = vadd.f32 %v652_v42, %v527_v32 }
  0xd1   :  { %897 = vst [vmem:[%s1343_s3 + $0xf0] sm:$0xff] %v639_v43 }
  0xd2   :  { %898 = vst [vmem:[%s1343_s3 + $0xf8] sm:$0xff] %v653_v44 }

</bundles_post_ra>
